<compile_context>
chip_gen: v5e
topology: v5e:2x2
jax: 0.10.0
libtpu: 0.0.40
codegen_flags: <defaults>
</compile_context>

<pallas_src>
import functools

import jax
import jax.numpy as jnp
from jax.experimental import pallas as pl
from jax.experimental.pallas import tpu as pltpu

# Deterministic stand-in for `random.sample(activation_names, num_activations)`.
CURRENT_ACTIVATIONS = ("relu", "tanh", "sigmoid", "sine", "swish")
NUM_ACT = len(CURRENT_ACTIVATIONS)

LANE = 128
_MIB = 1024 * 1024
_TB_CANDIDATES = (512, 256, 128, 64, 32, 16, 8)


def _round_up(x, m):
    return ((x + m - 1) // m) * m


def _default_act_dtype():
    """bf16 activation math on bf16-capable VPU/EUP generations (v6e/v7x),
    f32 elsewhere (v5e and older have no bf16 VPU/EUP)."""
    try:
        kind = jax.devices()[0].device_kind.lower()
    except Exception:
        return jnp.float32
    if any(v in kind for v in ("v2", "v3", "v4", "v5")):
        return jnp.float32
    return jnp.bfloat16


def _vmem_budget_bytes():
    """Per-core VMEM budget used for tile sizing (generation aware)."""
    try:
        kind = jax.devices()[0].device_kind.lower()
    except Exception:
        return 40 * _MIB
    if any(v in kind for v in ("v5", "v6")):
        return 96 * _MIB          # 128 MiB physical VMEM
    return 40 * _MIB              # v7x: 64 MiB / TC; unknown: conservative


# ---------------------------------------------------------------------------
# Kernel
# ---------------------------------------------------------------------------
def kan_linear_kernel(x_ref, w_ref, bias_ref, o_ref, a_ref, *, in_p, act_dtype):
    """One (batch-tile, out-feature-tile) block of the KANLinear forward.

    x_ref:    (tb, in_p)   VMEM, f32   input batch tile (zero-padded columns)
    w_ref:    (K, tn)      VMEM, bf16  K = NUM_ACT*in_p, scale_sum folded in
    bias_ref: (1, tn)      VMEM, f32
    o_ref:    (tb, tn)     VMEM, f32
    a_ref:    (tb, K)      VMEM, bf16  persistent scratch: stacked activations
    """
    # Compute the activation stack only on the first out-feature step of each
    # batch tile; every other step reuses the cached scratch (out-feature grid
    # axis is "arbitrary", so steps are sequential per core).
    @pl.when(pl.program_id(1) == 0)
    def _():
        x = x_ref[...].astype(act_dtype)
        s = jax.nn.sigmoid(x)                       # shared: sigmoid & swish
        # Order must match weight layout: slab i -> rows [i*in_p, (i+1)*in_p).
        slabs = (
            jnp.maximum(x, 0),                      # relu
            jnp.tanh(x),                            # tanh
            s,                                      # sigmoid
            jnp.sin(x),                             # sine
            x * s,                                  # swish = x * sigmoid(x)
        )
        for i, slab in enumerate(slabs):            # 128-aligned bf16 writes
            a_ref[:, i * in_p:(i + 1) * in_p] = slab.astype(jnp.bfloat16)

    # Single stacked-K bf16 matmul with f32 accumulation on the MXU.
    acc = jnp.dot(a_ref[...], w_ref[...], preferred_element_type=jnp.float32)
    o_ref[...] = acc + bias_ref[...]


# ---------------------------------------------------------------------------
# One-time parameter preparation (NOT in the per-call path)
# ---------------------------------------------------------------------------
def prepare_kan_params(activation_weights, weight_scale, bias):
    """Re-layout parameters once:
      activation_weights (out, in, na), weight_scale (out, in), bias (out,)
    -> w_packed    (NUM_ACT*in_p, out_p) bf16, scale_sum folded in, zero padded,
       bias_packed (1, out_p) f32,
       out_f       true out_features (for the final slice).
    in_p / out_p are in/out features rounded up to multiples of 128.
    """
    out_f, in_f, num_act = activation_weights.shape
    assert num_act == NUM_ACT

    scale_sum = jnp.sum(weight_scale.astype(jnp.float32), axis=1)          # (out,)
    w = jnp.transpose(activation_weights.astype(jnp.float32), (2, 1, 0))   # (na, in, out)
    w = w * scale_sum[None, None, :]                                       # fold scale

    in_p = _round_up(max(in_f, LANE), LANE)
    out_p = _round_up(max(out_f, LANE), LANE)
    w = jnp.pad(w, ((0, 0), (0, in_p - in_f), (0, out_p - out_f)))
    w_packed = w.reshape(num_act * in_p, out_p).astype(jnp.bfloat16)       # (K, out_p)
    bias_packed = jnp.pad(bias.astype(jnp.float32), (0, out_p - out_f))[None, :]
    return w_packed, bias_packed, out_f


# ---------------------------------------------------------------------------
# Tile sizing
# ---------------------------------------------------------------------------
def _footprint_bytes(tb, tn, in_p, K):
    return (2 * tb * in_p * 4          # x tiles (f32, double-buffered)
            + 2 * K * tn * 2           # weight tiles (bf16, double-buffered)
            + 2 * tn * 4               # bias tiles
            + 2 * tb * tn * 4          # out tiles (f32, double-buffered)
            + tb * K * 2               # activation scratch (bf16, persistent)
            + 4 * tb * in_p * 4)       # live activation temporaries headroom


def _fit_tiles(B, in_p, K, out_p, budget):
    # tb: largest candidate with minimal batch padding (bounds wasted work).
    pads = [(_round_up(B, t) - B, -t) for t in _TB_CANDIDATES]
    tb = -min(pads)[1]
    # tn: largest 128-multiple divisor of out_p (full out_p first -> weights
    # are DMA'd from HBM exactly once for the whole kernel).
    tn_candidates = sorted(
        {out_p // m for m in range(1, out_p // LANE + 1)
         if out_p % m == 0 and (out_p // m) % LANE == 0},
        reverse=True)
    while True:
        for tn in tn_candidates:
            if _footprint_bytes(tb, tn, in_p, K) <= budget:
                return tb, tn
        smaller = [t for t in _TB_CANDIDATES if t < tb]
        if not smaller:
            return tb, tn_candidates[-1]   # last resort: minimal tiles
        tb = max(smaller)


# ---------------------------------------------------------------------------
# Pallas wrapper (per-call path: batch/feature padding + the kernel)
# ---------------------------------------------------------------------------
@functools.partial(jax.jit, static_argnames=("out_f", "tb", "tn", "act_dtype"))
def kan_linear(x, w_packed, bias_packed, out_f, *, tb=None, tn=None,
               act_dtype=None):
    """x: (B, in_f) f32; w_packed: (NUM_ACT*in_p, out_p) bf16;
    bias_packed: (1, out_p) f32. Returns (B, out_f) f32."""
    B, in_f = x.shape
    K, out_p = w_packed.shape
    assert K % NUM_ACT == 0
    in_p = K // NUM_ACT
    assert in_p % LANE == 0 and out_p % LANE == 0 and in_f <= in_p

    if act_dtype is None:
        act_dtype = _default_act_dtype()

    budget = _vmem_budget_bytes()
    fit_tb, fit_tn = _fit_tiles(B, in_p, K, out_p, budget)
    tb = fit_tb if tb is None else _round_up(tb, 8)
    tn = fit_tn if tn is None else tn
    assert out_p % tn == 0 and tn % LANE == 0

    # Pad batch to the tile and features to in_p.  Padded feature columns hit
    # all-zero weight rows; padded batch rows are sliced off below.
    B_pad = _round_up(B, tb)
    x = jnp.pad(x.astype(jnp.float32), ((0, B_pad - B), (0, in_p - in_f)))

    grid = (B_pad // tb, out_p // tn)

    footprint = _footprint_bytes(tb, tn, in_p, K)
    vmem_limit = min(max(footprint + 4 * _MIB, 16 * _MIB), 112 * _MIB)

    w_fetches = 1 if tn == out_p else grid[0]
    cost = pl.CostEstimate(
        flops=2 * B_pad * K * out_p,
        transcendentals=4 * B_pad * in_p,        # tanh + sigmoid + sin (+ swish reuse)
        bytes_accessed=(B_pad * in_p * 4
                        + w_fetches * K * out_p * 2
                        + out_p * 4
                        + B_pad * out_p * 4),
    )

    kernel = functools.partial(kan_linear_kernel, in_p=in_p, act_dtype=act_dtype)

    out = pl.pallas_call(
        kernel,
        out_shape=jax.ShapeDtypeStruct((B_pad, out_p), jnp.float32),
        grid_spec=pltpu.PrefetchScalarGridSpec(
            num_scalar_prefetch=0,
            grid=grid,
            in_specs=[
                pl.BlockSpec((tb, in_p), lambda i, n: (i, 0)),   # x batch tile
                pl.BlockSpec((K, tn), lambda i, n: (0, n)),      # weight N tile
                pl.BlockSpec((1, tn), lambda i, n: (0, n)),      # bias N tile
            ],
            out_specs=pl.BlockSpec((tb, tn), lambda i, n: (i, n)),
            scratch_shapes=[pltpu.VMEM((tb, K), jnp.bfloat16)],  # activation cache
        ),
        compiler_params=pltpu.CompilerParams(
            # Batch axis parallel (megacore shards it; each core has its own
            # scratch), out-feature axis arbitrary (sequential -> scratch reuse).
            dimension_semantics=("parallel", "arbitrary"),
            vmem_limit_bytes=vmem_limit,
        ),
        cost_estimate=cost,
    )(x, w_packed, bias_packed)

    return out[:B, :out_f]


# ---------------------------------------------------------------------------
# Pure-JAX reference mirroring the PyTorch forward loop exactly (f32).
# ---------------------------------------------------------------------------
_ACT_FNS = {
    "relu": lambda x: jnp.maximum(x, 0.0),
    "tanh": jnp.tanh,
    "sigmoid": jax.nn.sigmoid,
    "sine": jnp.sin,
    "swish": lambda x: x * jax.nn.sigmoid(x),
}


def kan_linear_reference(x, activation_weights, weight_scale, bias):
    B = x.shape[0]
    out_f = activation_weights.shape[0]
    result = jnp.zeros((B, out_f), jnp.float32)
    for i, name in enumerate(CURRENT_ACTIVATIONS):
        activated = _ACT_FNS[name](x[..., None])               # (B, in, 1)
        w_i = activation_weights[:, :, i].T[None, :, :]         # (1, in, out)
        result = result + jnp.sum(activated * w_i, axis=1)      # (B, out)
    return result * jnp.sum(weight_scale, axis=1) + bias


if __name__ == "__main__":
    B, IN_F, OUT_F = 16, 32, 16

    key = jax.random.PRNGKey(0)
    k_x, k_w, k_b = jax.random.split(key, 3)

    # Deterministic inputs / parameters (shapes from KANLinear.__init__).
    x = jax.random.normal(k_x, (B, IN_F), dtype=jnp.float32)
    activation_weights = (
        jax.random.normal(k_w, (OUT_F, IN_F, NUM_ACT), dtype=jnp.float32)
        * (1.0 / NUM_ACT)
    )
    weight_scale = jnp.ones((OUT_F, IN_F), dtype=jnp.float32)   # init_scale = 1.0
    bias = jax.random.normal(k_b, (OUT_F,), dtype=jnp.float32) * 0.1

    # One-time parameter prep (transpose / scale-fold / pad / bf16 cast).
    w_packed, bias_packed, out_f = prepare_kan_params(
        activation_weights, weight_scale, bias)

    out = kan_linear(x, w_packed, bias_packed, out_f)
    out = jax.block_until_ready(out)

    ref = kan_linear_reference(x, activation_weights, weight_scale, bias)
    assert out.shape == (B, OUT_F)
    # bf16 matmul operands (and possibly bf16 activations) with f32
    # accumulation: check error relative to the output magnitude.
    scale = jnp.max(jnp.abs(ref)) + 1e-6
    max_err = jnp.max(jnp.abs(out - ref))
    assert max_err / scale < 3e-2, f"normalized max err = {max_err / scale}"

    print("KERNEL_OK")
</pallas_src>

<mosaic_0001>
module attributes {stable_mosaic.version = 11 : i64} {
  func.func @kan_linear_kernel(%arg0: i32, %arg1: i32, %arg2: memref<16x128xf32, #tpu.memory_space<vmem>>, %arg3: memref<640x128xbf16, #tpu.memory_space<vmem>>, %arg4: memref<1x128xf32, #tpu.memory_space<vmem>>, %arg5: memref<16x128xf32, #tpu.memory_space<vmem>>, %arg6: memref<16x640xbf16, #tpu.memory_space<vmem>>) attributes {dimension_semantics = [#tpu.dimension_semantics<parallel>, #tpu.dimension_semantics<arbitrary>], iteration_bounds = array<i64: 1, 1>, scalar_prefetch = 0 : i64, scratch_operands = 1 : i64, tpu.core_type = #tpu.core_type<tc>, window_params = [{transform_indices = @transform_0, window_bounds = array<i64: 16, 128>}, {transform_indices = @transform_1, window_bounds = array<i64: 640, 128>}, {transform_indices = @transform_2, window_bounds = array<i64: 1, 128>}, {transform_indices = @transform_3, window_bounds = array<i64: 16, 128>}]} {
    %c0_i32 = arith.constant 0 : i32
    %0 = arith.cmpi eq, %arg1, %c0_i32 : i32
    %1 = arith.extui %0 : i1 to i32
    %c0_i32_0 = arith.constant 0 : i32
    %2 = arith.cmpi ne, %1, %c0_i32_0 : i32
    scf.if %2 {
      %c0_8 = arith.constant 0 : index
      %c0_9 = arith.constant 0 : index
      %10 = vector.load %arg2[%c0_8, %c0_9] : memref<16x128xf32, #tpu.memory_space<vmem>>, vector<16x128xf32>
      %11 = arith.truncf %10 : vector<16x128xf32> to vector<16x128xbf16>
      %12 = arith.negf %11 : vector<16x128xbf16>
      %13 = math.exp %12 : vector<16x128xbf16>
      %cst_10 = arith.constant 1.000000e+00 : bf16
      %14 = vector.broadcast %cst_10 : bf16 to vector<16x128xbf16>
      %15 = arith.addf %14, %13 : vector<16x128xbf16>
      %16 = arith.divf %14, %15 : vector<16x128xbf16>
      %cst_11 = arith.constant 0.000000e+00 : bf16
      %17 = vector.broadcast %cst_11 : bf16 to vector<16x128xbf16>
      %18 = arith.maximumf %11, %17 : vector<16x128xbf16>
      %19 = math.tanh %11 : vector<16x128xbf16>
      %20 = math.sin %11 : vector<16x128xbf16>
      %21 = arith.mulf %11, %16 : vector<16x128xbf16>
      %c0_12 = arith.constant 0 : index
      %c0_13 = arith.constant 0 : index
      %22 = vector.load %arg6[%c0_12, %c0_13] : memref<16x640xbf16, #tpu.memory_space<vmem>>, vector<16x128xbf16>
      tpu.vector_store %arg6[%c0_12, %c0_13], %18 {strides = array<i32>} : memref<16x640xbf16, #tpu.memory_space<vmem>>, vector<16x128xbf16>,
      %c0_14 = arith.constant 0 : index
      %c128 = arith.constant 128 : index
      %23 = vector.load %arg6[%c0_14, %c128] : memref<16x640xbf16, #tpu.memory_space<vmem>>, vector<16x128xbf16>
      tpu.vector_store %arg6[%c0_14, %c128], %19 {strides = array<i32>} : memref<16x640xbf16, #tpu.memory_space<vmem>>, vector<16x128xbf16>,
      %c0_15 = arith.constant 0 : index
      %c256 = arith.constant 256 : index
      %24 = vector.load %arg6[%c0_15, %c256] : memref<16x640xbf16, #tpu.memory_space<vmem>>, vector<16x128xbf16>
      tpu.vector_store %arg6[%c0_15, %c256], %16 {strides = array<i32>} : memref<16x640xbf16, #tpu.memory_space<vmem>>, vector<16x128xbf16>,
      %c0_16 = arith.constant 0 : index
      %c384 = arith.constant 384 : index
      %25 = vector.load %arg6[%c0_16, %c384] : memref<16x640xbf16, #tpu.memory_space<vmem>>, vector<16x128xbf16>
      tpu.vector_store %arg6[%c0_16, %c384], %20 {strides = array<i32>} : memref<16x640xbf16, #tpu.memory_space<vmem>>, vector<16x128xbf16>,
      %c0_17 = arith.constant 0 : index
      %c512 = arith.constant 512 : index
      %26 = vector.load %arg6[%c0_17, %c512] : memref<16x640xbf16, #tpu.memory_space<vmem>>, vector<16x128xbf16>
      tpu.vector_store %arg6[%c0_17, %c512], %21 {strides = array<i32>} : memref<16x640xbf16, #tpu.memory_space<vmem>>, vector<16x128xbf16>,
    } else {
    }
    %c0 = arith.constant 0 : index
    %c0_1 = arith.constant 0 : index
    %3 = vector.load %arg6[%c0, %c0_1] : memref<16x640xbf16, #tpu.memory_space<vmem>>, vector<16x640xbf16>
    %c0_2 = arith.constant 0 : index
    %c0_3 = arith.constant 0 : index
    %4 = vector.load %arg3[%c0_2, %c0_3] : memref<640x128xbf16, #tpu.memory_space<vmem>>, vector<640x128xbf16>
    %cst = arith.constant dense<0.000000e+00> : vector<16x128xf32>
    %5 = tpu.matmul %3, %4, %cst {dimension_numbers = #tpu.dot_dimension_numbers<[1], [0], [0], [1], [0, 0, 1, 1], [], []>} : vector<16x640xbf16>, vector<640x128xbf16>, vector<16x128xf32> -> vector<16x128xf32>
    %c0_4 = arith.constant 0 : index
    %c0_5 = arith.constant 0 : index
    %6 = vector.load %arg4[%c0_4, %c0_5] : memref<1x128xf32, #tpu.memory_space<vmem>>, vector<1x128xf32>
    %7 = vector.broadcast %6 : vector<1x128xf32> to vector<16x128xf32>
    %8 = arith.addf %5, %7 : vector<16x128xf32>
    %c0_6 = arith.constant 0 : index
    %c0_7 = arith.constant 0 : index
    %9 = vector.load %arg5[%c0_6, %c0_7] : memref<16x128xf32, #tpu.memory_space<vmem>>, vector<16x128xf32>
    tpu.vector_store %arg5[%c0_6, %c0_7], %8 {strides = array<i32>} : memref<16x128xf32, #tpu.memory_space<vmem>>, vector<16x128xf32>,
    return
  }
  func.func @transform_0(%arg0: i32, %arg1: i32) -> (i32, i32) {
    %c0_i32 = arith.constant 0 : i32
    %c0_i32_0 = arith.constant 0 : i32
    return %arg0, %c0_i32 : i32, i32
  }
  func.func @transform_1(%arg0: i32, %arg1: i32) -> (i32, i32) {
    %c0_i32 = arith.constant 0 : i32
    %c0_i32_0 = arith.constant 0 : i32
    return %c0_i32, %arg1 : i32, i32
  }
  func.func @transform_2(%arg0: i32, %arg1: i32) -> (i32, i32) {
    %c0_i32 = arith.constant 0 : i32
    %c0_i32_0 = arith.constant 0 : i32
    return %c0_i32, %arg1 : i32, i32
  }
  func.func @transform_3(%arg0: i32, %arg1: i32) -> (i32, i32) {
    %c0_i32 = arith.constant 0 : i32
    return %arg0, %arg1 : i32, i32
  }
}

</mosaic_0001>

<bundles_post_ra>
// kernel: kan_linear.1
= control target key start
LH: loop header
LB: loop body
LE: loop exit
PB: predicated region body
PF: predicated region fallthrough
CT: control target
= control target key end

     0   :  { %8 = vsyncpa [#allocation4], 0  ;;  %s2032_s0 = inlined_call_operand.vmem [shape: f32[16,128], index: 0, kind: input, shape index: {}]   ;;  %s2033_s1 = inlined_call_operand.hbm [shape: bf16[640,128], index: 1, kind: input, shape index: {}]   ;;  %s2034_s2 = inlined_call_operand.vmem [shape: f32[1,128], index: 2, kind: input, shape index: {}]   ;;  %s2035_s3 = inlined_call_operand.hbm [shape: f32[16,128], index: 3, kind: output, shape index: {}]  }
   0x1   :  { %9 = vsyncpa [#allocation5], 0  ;;  %s16_s14 = sshll.u32 %s2033_s1, 4  ;;  %s1518_s15 = smov [#allocation3]   ;;  %s17_s14 = int_to_ptr.hbm [resolvable:$true] %s16_s14 }
   0x2   :  { %s18_s16 = sshll.u32 %s1518_s15, 4  ;;  %s1519_s17 = smov 64   ;;  %s19_s16 = int_to_ptr.vmem [resolvable:$true] %s18_s16 }
   0x3   :  { %s1520_s18 = smov 4  }
   0x4   :  { %24 = dma.hbm_to_vmem [thread:$0]  %s17_s14, 5120, %s19_s16, [#allocation4], %s1519_s17, %s1519_s17, %s1520_s18  }
   0x5   :  { %1514 = dma.done.wait [#allocation4], 5120  }
   0x6   :  { %1515 = vsyncadd [#allocation4], 4294962176  ;;  %v1379_v0 = vld [vmem:[#allocation3 + $0x38] sm:$0xff]  ;;  %v1378_v2 = vld [vmem:[#allocation3 + $0x30] sm:$0xff]  ;;  %v1521_v52 = vmov 1065369472  }
   0x7   :  { %v1387_v1 = vld [vmem:[#allocation3 + $0x78] sm:$0xff]  ;;  %1084 = vmatpush.bf16.msra.mxu0 %v1379_v0  ;;  %v1386_v3 = vld [vmem:[#allocation3 + $0x70] sm:$0xff]  ;;  %v1377_v7 = vld [vmem:[#allocation3 + $0x28] sm:$0xff]  ;;  %v1589_v53 = vunpack.c.h.bf16 %v1521_v52  ;;  %v1591_v54 = vunpack.c.l.bf16 %v1521_v52  ;;  %s1529_s23 = smov [#allocation6]   ;;  %s1162_s26 = sshll.u32 %s2035_s3, 4  ;;  %s1163_s26 = int_to_ptr.hbm [resolvable:$true] %s1162_s26 }
   0x8   :  { %1098 = vmatpush.bf16.msra.mxu1 %v1387_v1  ;;  %v1395_v4 = vld [vmem:[#allocation3 + $0xb8] sm:$0xff]  ;;  %v1394_v6 = vld [vmem:[#allocation3 + $0xb0] sm:$0xff]  ;;  %v1385_v9 = vld [vmem:[#allocation3 + $0x68] sm:$0xff]  ;;  %s1160_s24 = sshll.u32 %s1529_s23, 4  ;;  %s1530_s27 = smov 128   ;;  %s1161_s24 = int_to_ptr.vmem [resolvable:$true] %s1160_s24 }
   0x9   :  { %v1403_v5 = vld [vmem:[#allocation3 + $0xf8] sm:$0xff]  ;;  %1112 = vmatpush.bf16.msra.mxu2 %v1395_v4  ;;  %v1402_v8 = vld [vmem:[#allocation3 + $0xf0] sm:$0xff]  ;;  %v1393_v10 = vld [vmem:[#allocation3 + $0xa8] sm:$0xff]  ;;  %s1531_s28 = smov 8  }
   0xa   :  { %1126 = vmatpush.bf16.msra.mxu3 %v1403_v5  ;;  %v36_v11 = vld [vmem:[%s2032_s0] sm:$0xff]  ;;  %v37_v12 = vld [vmem:[%s2032_s0 + $0x8] sm:$0xff]  ;;  %v1401_v14 = vld [vmem:[#allocation3 + $0xe8] sm:$0xff] }
   0xb   :  { %1085 = vmatpush.bf16.msra.mxu0 %v1378_v2  ;;  %v1376_v13 = vld [vmem:[#allocation3 + $0x20] sm:$0xff]  ;;  %v1561_v15 = vpack.c.bf16 %v36_v11, %v36_v11  ;;  %v1563_v16 = vpack.c.bf16 %v37_v12, %v37_v12  ;;  %v1375_v22 = vld [vmem:[#allocation3 + $0x18] sm:$0xff]  ;;  %v1374_v36 = vld [vmem:[#allocation3 + $0x10] sm:$0xff]  ;;  %v1522_v2 = vmov 683565275  }
   0xc   :  { %1099 = vmatpush.bf16.msra.mxu1 %v1386_v3  ;;  %v1384_v17 = vld [vmem:[#allocation3 + $0x60] sm:$0xff]  ;;  %v1383_v27 = vld [vmem:[#allocation3 + $0x58] sm:$0xff]  ;;  %v1382_v39 = vld [vmem:[#allocation3 + $0x50] sm:$0xff]  ;;  %v1524_v12 = vmov 2131351028  }
   0xd   :  { %1113 = vmatpush.bf16.msra.mxu2 %v1394_v6  ;;  %v1566_v18 = vunpack.c.l.bf16 %v1561_v15  ;;  %v1569_v19 = vunpack.c.l.bf16 %v1563_v16  ;;  %v1572_v20 = vunpack.i.l.bf16 %v1561_v15  ;;  %v1392_v21 = vld [vmem:[#allocation3 + $0xa0] sm:$0xff]  ;;  %v1577_v25 = vunpack.i.h.bf16 %v1561_v15  ;;  %v1391_v31 = vld [vmem:[#allocation3 + $0x98] sm:$0xff]  ;;  %v1373_v44 = vld [vmem:[#allocation3 + $0x8] sm:$0xff] }
   0xe   :  { %1127 = vmatpush.bf16.msra.mxu3 %v1402_v8  ;;  %v1400_v23 = vld [vmem:[#allocation3 + $0xe0] sm:$0xff]  ;;  %v41_v28 = vxor.u32 2147516416, %v1563_v16  ;;  %v1399_v37 = vld [vmem:[#allocation3 + $0xd8] sm:$0xff]  ;;  %v1381_v50 = vld [vmem:[#allocation3 + $0x48] sm:$0xff]  ;;  %v1594_v56 = vunpack.i.l.bf16 %v1563_v16 }
   0xf   :  { %1086 = vmatpush.bf16.msra.mxu0 %v1377_v7  ;;  %v75_v24 = vmax.f32 %v1569_v19, 0.0  ;;  %1450 = vtanh.f32 %v1566_v18  ;;  %v86_v26 = vand.u32 2147483647, %v1572_v20  ;;  %v89_v29 = vand.u32 2139095040, %v1572_v20  ;;  %v1372_v57 = vld [vmem:[#allocation3] sm:$0xff]  ;;  %v1411_v62 = vld [vmem:[#allocation3 + $0x138] sm:$0xff] }
  0x10   :  { %1100 = vmatpush.bf16.msra.mxu1 %v1385_v9  ;;  %v74_v32 = vmax.f32 %v1566_v18, 0.0  ;;  %v43_v33 = vunpack.c.l.bf16 %v41_v28  ;;  %v217_v38 = vand.u32 2139095040, %v1577_v25  ;;  %v214_v48 = vand.u32 2147483647, %v1577_v25  ;;  %v1380_v63 = vld [vmem:[#allocation3 + $0x40] sm:$0xff]  ;;  %v1390_v7 = vld [vmem:[#allocation3 + $0x90] sm:$0xff] }
  0x11   :  { %1114 = vmatpush.bf16.msra.mxu2 %v1393_v10  ;;  %v77_v30 = vpack.c.bf16 %v75_v24, %v75_v24  ;;  %v90_v34 = vshrl.u32 %v89_v29, 23  ;;  %v93_v35 = vand.u32 8388607, %v86_v26  ;;  %v1398_v8 = vld [vmem:[#allocation3 + $0xd0] sm:$0xff]  ;;  %v40_v9 = vxor.u32 2147516416, %v1561_v15  ;;  %v1389_v15 = vld [vmem:[#allocation3 + $0x88] sm:$0xff] }
  0x12   :  { %1128 = vmatpush.bf16.msra.mxu3 %v1401_v14  ;;  %v46_v40 = vmul.f32 1.442695, %v43_v33  ;;  %v218_v49 = vshrl.u32 %v217_v38, 23  ;;  %v1602_v60 = vand.u32 8388607, %v214_v48  ;;  %v1397_v38 = vld [vmem:[#allocation3 + $0xc8] sm:$0xff] }
  0x13   :  { %1087 = vmatpush.bf16.msra.mxu0 %v1376_v13  ;;  %719 = vst [vmem:[#allocation2 + $0x14] sm:$0xf] %v77_v30  ;;  %v1175_v41 = vadd.s32 4294967169, %v90_v34  ;;  %v94_v42 = vor.u32 8388608, %v93_v35  ;;  %v1523_v10 = vmov 2475754826   ;;  %v42_v29 = vunpack.c.l.bf16 %v40_v9 }
  0x14   :  { %1101 = vmatpush.bf16.msra.mxu1 %v1384_v17  ;;  %1452 = vpow2.f32 %v46_v40  ;;  %v1178_v59 = vadd.s32 4294967169, %v218_v49  ;;  %v1388_v49 = vld [vmem:[#allocation3 + $0x80] sm:$0xff] }
  0x15   :  { %1115 = vmatpush.bf16.msra.mxu2 %v1392_v21  ;;  %v1451_v43 = vpop.eup %1450  ;;  %v96_v46 = vadd.s32 1, %v1175_v41  ;;  %v1586_v47 = vshll.u32 %v94_v42, 8  ;;  %1454 = vtanh.f32 %v1569_v19  ;;  %v1525_v21 = vmov 2102212464  }
  0x16   :  { %1129 = vmatpush.bf16.msra.mxu3 %v1400_v23  ;;  %v1415_v45 = vpack.c.bf16 %v1451_v43, %v74_v32  ;;  %v1526_v23 = vmov 920167782   ;;  %v1410_v32 = vld [vmem:[#allocation3 + $0x130] sm:$0xff]  ;;  %v1527_v43 = vmov 1326507024  }
  0x17   :  { %1088 = vmatpush.bf16.msra.mxu0 %v1375_v22  ;;  %vm97_vm0 = vcmp.gt.s32.totalorder %v96_v46, 0  ;;  %v1598_v58 = vand.u32 65535, %v1586_v47  ;;  %v1608_v4 = vshrl.u32 %v1586_v47, 16 }
  0x18   :  { %1102 = vmatpush.bf16.msra.mxu1 %v1383_v27  ;;  %1416 = vst [vmem:[#allocation2] sm:$0xff] %v1415_v45   ;;  %v98_v51 = vsel %vm97_vm0, %v96_v46, 0  ;;  %v224_v45 = vadd.s32 1, %v1178_v59 }
  0x19   :  { %1116 = vmatpush.bf16.msra.mxu2 %v1391_v31  ;;  %v100_v55 = vand.u32 31, %v98_v51  ;;  %v1604_v0 = vshrl.u32 %v98_v51, 5 }
  0x1a   :  { %1130 = vmatpush.bf16.msra.mxu3 %v1399_v37  ;;  %v1453_v61 = vpop.eup %1452  ;;  %v1369_v5 = vld [vmem:[#allocation2 + $0x10] sm:$0xf0]  ;;  %vm225_vm5 = vcmp.gt.s32.totalorder %v224_v45, 0 }
  0x1b   :  { %1089 = vmatpush.bf16.msra.mxu0 %v1374_v36  ;;  %v101_v1 = vsub.s32 32, %v100_v55  ;;  %v103_v3 = vshll.u32 %v1522_v2, %v100_v55  ;;  %v49_v6 = vpack.c.bf16 %v1453_v61, %v1453_v61  ;;  %v106_v11 = vshll.u32 %v1523_v10, %v100_v55  ;;  %v1621_v36 = vpop.eup %1454 }
  0x1c   :  { %1103 = vmatpush.bf16.msra.mxu1 %v1382_v39  ;;  %v109_v13 = vshll.u32 %v1524_v12, %v100_v55  ;;  %v112_v22 = vshll.u32 %v1525_v21, %v100_v55  ;;  %v115_v24 = vshll.u32 %v1526_v23, %v100_v55  ;;  %vm118_vm1 = vcmp.lt.s32.totalorder %v1604_v0, 1 }
  0x1d   :  { %v102_v14 = vshrl.u32 %v1522_v2, %v101_v1  ;;  %v104_v17 = vshrl.u32 %v1523_v10, %v101_v1  ;;  %v51_v28 = vunpack.c.l.bf16 %v49_v6  ;;  %1117 = vmatpush.bf16.msra.mxu2 %v1390_v7  ;;  %v107_v30 = vshrl.u32 %v1524_v12, %v101_v1 }
  0x1e   :  { %v110_v31 = vshrl.u32 %v1525_v21, %v101_v1  ;;  %v113_v35 = vshrl.u32 %v1526_v23, %v101_v1  ;;  %1131 = vmatpush.bf16.msra.mxu3 %v1398_v8  ;;  %v44_v39 = vmul.f32 1.442695, %v42_v29  ;;  %vm120_vm2 = vcmp.lt.s32.totalorder %v1604_v0, 3 }
  0x1f   :  { %1090 = vmatpush.bf16.msra.mxu0 %v1373_v44  ;;  %v1189_v27 = vld [vmem:[#allocation2] sm:$0xf]  ;;  %v105_v34 = vor.u32 %v104_v17, %v103_v3  ;;  %v53_v37 = vadd.f32 1.0, %v51_v28  ;;  %v108_v40 = vor.u32 %v107_v30, %v106_v11  ;;  %v116_v44 = vshrl.u32 %v1527_v43, %v101_v1 }
  0x20   :  { %1104 = vmatpush.bf16.msra.mxu1 %v1381_v50  ;;  %v1190_v33 = vor.u32 %v1369_v5, %v1189_v27  ;;  %v111_v41 = vor.u32 %v110_v31, %v109_v13  ;;  %v114_v42 = vor.u32 %v113_v35, %v112_v22  ;;  %1456 = vpow2.f32 %v44_v39  ;;  %v1409_v50 = vld [vmem:[#allocation3 + $0x128] sm:$0xff]  ;;  %v1408_v13 = vld [vmem:[#allocation3 + $0x120] sm:$0xff] }
  0x21   :  { %v55_v46 = vpack.c.bf16 %v53_v37, %v53_v37  ;;  %1118 = vmatpush.bf16.msra.mxu2 %v1389_v15  ;;  %vm119_vm3 = vcmp.lt.s32.totalorder %v1604_v0, 2  ;;  %vm121_vm4 = vcmp.lt.s32.totalorder %v1604_v0, 4  ;;  %v117_v51 = vor.u32 %v116_v44, %v115_v24 }
  0x22   :  { %v123_v52 = vsel %vm121_vm4, %v111_v41, 2102212464  ;;  %v126_v55 = vsel %vm118_vm1, %v105_v34, %v108_v40  ;;  %1132 = vmatpush.bf16.msra.mxu3 %v1397_v38  ;;  %v130_v6 = vsel %vm118_vm1, %v108_v40, %v111_v41  ;;  %v404_v17 = vand.u32 2139095040, %v1594_v56  ;;  %v1407_v38 = vld [vmem:[#allocation3 + $0x118] sm:$0xff] }
  0x23   :  { %1091 = vmatpush.bf16.msra.mxu0 %v1372_v57  ;;  %v127_v57 = vsel %vm121_vm4, %v114_v42, 920167782  ;;  %v65_v59 = vunpack.c.h.bf16 %v55_v46  ;;  %v66_v61 = vunpack.c.l.bf16 %v55_v46  ;;  %v124_v3 = vsel %vm120_vm2, %v108_v40, %v123_v52 }
  0x24   :  { %1105 = vmatpush.bf16.msra.mxu1 %v1380_v63  ;;  %v122_v63 = vsel %vm118_vm1, %v102_v14, %v105_v34  ;;  %v128_v1 = vsel %vm120_vm2, %v111_v41, %v127_v57  ;;  %v131_v7 = vsel %vm121_vm4, %v117_v51, 1326507024  ;;  %v222_v15 = vor.u32 8388608, %v1602_v60 }
  0x25   :  { %v129_v5 = vsel %vm119_vm3, %v126_v55, %v128_v1  ;;  %1458 = vrcp.f32 %v65_v59  ;;  %1119 = vmatpush.bf16.msra.mxu2 %v1388_v49  ;;  %v132_v8 = vsel %vm120_vm2, %v114_v42, %v131_v7  ;;  %v1654_v30 = vsel %vm119_vm3, %v122_v63, %v124_v3 }
  0x26   :  { %1092 = vmatmul.bf16.vlgmr.msra.gmra.mxu0 %v1190_v33  ;;  %v159_v9 = vand.u32 65535, %v129_v5  ;;  %v160_v11 = vshrl.u32 %v129_v5, 16  ;;  %1460 = vrcp.f32 %v66_v61  ;;  %v133_v14 = vsel %vm119_vm3, %v130_v6, %v132_v8  ;;  %v1457_v22 = vpop.eup %1456  ;;  %v1406_v61 = vld [vmem:[#allocation3 + $0x110] sm:$0xff] }
  0x27   :  { %1140 = vmatpush.bf16.msrb.mxu0 %v1411_v62  ;;  %v1396_v62 = vld [vmem:[#allocation3 + $0xc0] sm:$0xff]  ;;  %v137_v24 = vand.u32 65535, %v133_v14  ;;  %v138_v27 = vshrl.u32 %v133_v14, 16  ;;  %v48_v29 = vpack.c.bf16 %v1457_v22, %v1457_v22  ;;  %v226_v37 = vsel %vm225_vm5, %v224_v45, 0 }
  0x28   :  { %1133 = vmatpush.bf16.msra.mxu3 %v1396_v62  ;;  %v162_v28 = vmul.u32 %v160_v11, %v1598_v58  ;;  %v161_v31 = vmul.u32 %v159_v9, %v1598_v58  ;;  %v164_v0 = vmul.u32 %v160_v11, %v1608_v4 }
  0x29   :  { %v139_v33 = vmul.u32 %v137_v24, %v1598_v58  ;;  %v140_v34 = vmul.u32 %v138_v27, %v1598_v58  ;;  %v141_v35 = vmul.u32 %v137_v24, %v1608_v4  ;;  %v50_v39 = vunpack.c.l.bf16 %v48_v29 }
  0x2a   :  { %v142_v40 = vmul.u32 %v138_v27, %v1608_v4  ;;  %v165_v41 = vshll.u32 %v162_v28, 16  ;;  %v166_v49 = vshrl.u32 %v162_v28, 16  ;;  %v228_v24 = vand.u32 31, %v226_v37  ;;  %v1405_v27 = vld [vmem:[#allocation3 + $0x108] sm:$0xff] }
  0x2b   :  { %1141 = vmatpush.bf16.msrb.mxu0 %v1410_v32  ;;  %v1658_v32 = vmul.u32 %v159_v9, %v1608_v4  ;;  %v1459_v42 = vpop.eup %1458  ;;  %v143_v44 = vshll.u32 %v140_v34, 16  ;;  %v145_v46 = vshll.u32 %v141_v35, 16  ;;  %v52_v52 = vadd.f32 1.0, %v50_v39 }
  0x2c   :  { %v1461_v51 = vpop.eup %1460  ;;  %v1667_v58 = vmul.f32 %v1459_v42, %v1589_v53  ;;  %v144_v45 = vshrl.u32 %v140_v34, 16  ;;  %vm169_vm6 = vc.u32 %v161_v31, %v165_v41  ;;  %v1528_v4 = vmov 0  }
  0x2d   :  { %v1670_v55 = vmul.f32 %v1461_v51, %v1591_v54  ;;  %vm147_vm7 = vc.u32 %v139_v33, %v143_v44  ;;  %v149_v57 = vadd.s32 %v143_v44, %v139_v33  ;;  %v170_v59 = vsel %vm169_vm6, 1, %v1528_v4  ;;  %v1367_v44 = vld [vmem:[#allocation2 + $0x4] sm:$0xf] }
  0x2e   :  { %v54_v62 = vpack.c.bf16 %v52_v52, %v52_v52  ;;  %v148_v63 = vsel %vm147_vm7, 1, %v1528_v4  ;;  %v171_v1 = vadd.s32 %v165_v41, %v161_v31  ;;  %v172_v3 = vadd.s32 %v170_v59, %v164_v0 }
  0x2f   :  { %1142 = vmatpush.bf16.msrb.mxu0 %v1409_v50  ;;  %v167_v50 = vshll.u32 %v1658_v32, 16  ;;  %v71_v5 = vpack.c.bf16 %v1667_v58, %v1670_v55  ;;  %v1420_v6 = vpack.c.bf16 %v1670_v55, %v1621_v36  ;;  %v150_v7 = vadd.s32 %v148_v63, %v142_v40  ;;  %v1449_v55 = vld [vmem:[%s2034_s2] ss:$0 sm:$0xff] }
  0x30   :  { %vm151_vm8 = vc.u32 %v149_v57, %v145_v46  ;;  %v58_v8 = vunpack.c.h.bf16 %v54_v62  ;;  %v59_v9 = vunpack.c.l.bf16 %v54_v62  ;;  %v168_v28 = vshrl.u32 %v1658_v32, 16  ;;  %v1404_v46 = vld [vmem:[#allocation3 + $0x100] sm:$0xff] }
  0x31   :  { %v152_v11 = vsel %vm151_vm8, 1, %v1528_v4  ;;  %vm173_vm9 = vc.u32 %v171_v1, %v167_v50  ;;  %1432 = vst [vmem:[#allocation2 + $0x18] sm:$0xff] %v1420_v6   ;;  %v1681_v29 = vadd.s32 %v171_v1, %v167_v50  ;;  %v229_v33 = vsub.s32 32, %v228_v24 }
  0x32   :  { %v154_v14 = vadd.s32 %v152_v11, %v150_v7  ;;  %v174_v22 = vsel %vm173_vm9, 1, %v1528_v4  ;;  %1462 = vrcp.f32 %v58_v8  ;;  %v231_v34 = vshll.u32 %v1522_v2, %v228_v24 }
  0x33   :  { %1143 = vmatpush.bf16.msrb.mxu0 %v1408_v13  ;;  %v146_v13 = vshrl.u32 %v141_v35, 16  ;;  %v176_v36 = vadd.s32 %v174_v22, %v172_v3  ;;  %1464 = vrcp.f32 %v59_v9  ;;  %v1684_v39 = vshrl.u32 %v226_v37, 5 }
  0x34   :  { %v155_v31 = vadd.s32 %v154_v14, %v144_v45  ;;  %v234_v35 = vshll.u32 %v1523_v10, %v228_v24  ;;  %v240_v40 = vshll.u32 %v1525_v21, %v228_v24  ;;  %v232_v41 = vshrl.u32 %v1523_v10, %v229_v33 }
  0x35   :  { %v235_v32 = vshrl.u32 %v1524_v12, %v229_v33  ;;  %v237_v42 = vshll.u32 %v1524_v12, %v228_v24  ;;  %v241_v37 = vshrl.u32 %v1526_v23, %v229_v33  ;;  %v243_v51 = vshll.u32 %v1526_v23, %v228_v24 }
  0x36   :  { %v1688_v0 = vadd.s32 %v155_v31, %v146_v13  ;;  %v179_v52 = vmul.u32 %v1586_v47, %v1654_v30  ;;  %v233_v45 = vor.u32 %v232_v41, %v231_v34  ;;  %v244_v1 = vshrl.u32 %v1527_v43, %v229_v33 }
  0x37   :  { %1144 = vmatpush.bf16.msrb.mxu0 %v1407_v38  ;;  %v177_v38 = vadd.s32 %v176_v36, %v166_v49  ;;  %v238_v49 = vshrl.u32 %v1525_v21, %v229_v33  ;;  %v236_v57 = vor.u32 %v235_v32, %v234_v35  ;;  %v242_v63 = vor.u32 %v241_v37, %v240_v40 }
  0x38   :  { %vm181_vm10 = vc.u32 %v1688_v0, %v1681_v29  ;;  %v1463_v59 = vpop.eup %1462  ;;  %vm246_vm11 = vcmp.lt.s32.totalorder %v1684_v39, 1  ;;  %vm249_vm12 = vcmp.lt.s32.totalorder %v1684_v39, 4  ;;  %v245_v9 = vor.u32 %v244_v1, %v243_v51 }
  0x39   :  { %v178_v50 = vadd.s32 %v177_v38, %v168_v28  ;;  %v1465_v3 = vpop.eup %1464  ;;  %v1703_v7 = vmul.f32 %v1463_v59, %v1589_v53  ;;  %v239_v8 = vor.u32 %v238_v49, %v237_v42  ;;  %vm248_vm13 = vcmp.lt.s32.totalorder %v1684_v39, 3 }
  0x3a   :  { %v1707_v47 = vmul.f32 %v1465_v3, %v1591_v54  ;;  %vm247_vm14 = vcmp.lt.s32.totalorder %v1684_v39, 2  ;;  %v254_v53 = vsel %vm246_vm11, %v233_v45, %v236_v57  ;;  %v255_v54 = vsel %vm249_vm12, %v242_v63, 920167782 }
  0x3b   :  { %1145 = vmatpush.bf16.msrb.mxu0 %v1406_v61  ;;  %v1191_v61 = vld [vmem:[#allocation2 + $0x14] sm:$0xf0]  ;;  %v182_v62 = vadd.s32 1, %v178_v50  ;;  %v256_v22 = vsel %vm248_vm13, %v239_v8, %v255_v54  ;;  %v258_v24 = vsel %vm246_vm11, %v236_v57, %v239_v8  ;;  %v259_v28 = vsel %vm249_vm12, %v245_v9, 1326507024 }
  0x3c   :  { %v1194_v6 = vor.u32 %v1367_v44, %v1191_v61  ;;  %v64_v13 = vpack.c.bf16 %v1703_v7, %v1707_v47  ;;  %v1730_v36 = vshll.u32 %v222_v15, 8  ;;  %v405_v31 = vshrl.u32 %v404_v17, 23 }
  0x3d   :  { %v183_v30 = vsel %vm181_vm10, %v182_v62, %v178_v50  ;;  %v260_v38 = vsel %vm248_vm13, %v242_v63, %v259_v28  ;;  %v230_v41 = vshrl.u32 %v1522_v2, %v229_v33  ;;  %v251_v51 = vsel %vm249_vm12, %v239_v8, 2102212464 }
  0x3e   :  { %1106 = vmatmul.bf16.vlgmr.msra.gmra.mxu1 %v1194_v6  ;;  %v184_v11 = vadd.s32 %v183_v30, %v179_v52  ;;  %v261_v32 = vsel %vm247_vm14, %v258_v24, %v260_v38  ;;  %v263_v42 = vand.u32 65535, %v1730_v36  ;;  %v264_v60 = vshrl.u32 %v1730_v36, 16 }
  0x3f   :  { %1146 = vmatpush.bf16.msrb.mxu0 %v1405_v27  ;;  %v257_v27 = vsel %vm247_vm14, %v254_v53, %v256_v22  ;;  %v265_v44 = vand.u32 65535, %v261_v32  ;;  %v266_v17 = vshrl.u32 %v261_v32, 16  ;;  %v1181_v49 = vadd.s32 4294967169, %v405_v31 }
  0x40   :  { %v185_v14 = vadd.s32 536870912, %v184_v11  ;;  %v287_v35 = vand.u32 65535, %v257_v27  ;;  %v288_v40 = vshrl.u32 %v257_v27, 16  ;;  %v250_v59 = vsel %vm246_vm11, %v230_v41, %v233_v45 }
  0x41   :  { %v267_v52 = vmul.u32 %v265_v44, %v263_v42  ;;  %v268_v33 = vmul.u32 %v266_v17, %v263_v42  ;;  %v269_v61 = vmul.u32 %v265_v44, %v264_v60  ;;  %v270_v3 = vmul.u32 %v266_v17, %v264_v60 }
  0x42   :  { %v1734_v34 = vshrl.u32 %v185_v14, 30  ;;  %v291_v50 = vmul.u32 %v287_v35, %v264_v60  ;;  %v289_v62 = vmul.u32 %v287_v35, %v263_v42  ;;  %v252_v30 = vsel %vm248_vm13, %v236_v57, %v251_v51 }
  0x43   :  { %1147 = vmatpush.bf16.msrb.mxu0 %v1404_v46  ;;  %v290_v46 = vmul.u32 %v288_v40, %v263_v42  ;;  %v271_v6 = vshll.u32 %v268_v33, 16  ;;  %v273_v9 = vshll.u32 %v269_v61, 16  ;;  %v272_v8 = vshrl.u32 %v268_v33, 16 }
  0x44   :  { %v187_v15 = vshll.u32 %v1734_v34, 30  ;;  %v295_v53 = vshll.u32 %v291_v50, 16  ;;  %v274_v41 = vshrl.u32 %v269_v61, 16  ;;  %v411_v44 = vadd.s32 1, %v1181_v49 }
  0x45   :  { %v293_v63 = vshll.u32 %v290_v46, 16  ;;  %vm275_vm0 = vc.u32 %v267_v52, %v271_v6  ;;  %v277_v14 = vadd.s32 %v271_v6, %v267_v52  ;;  %v294_v28 = vshrl.u32 %v290_v46, 16 }
  0x46   :  { %v188_v37 = vsub.s32 %v184_v11, %v187_v15  ;;  %v292_v11 = vmul.u32 %v288_v40, %v264_v60  ;;  %v276_v45 = vsel %vm275_vm0, 1, %v1528_v4  ;;  %v180_v40 = vadd.s32 %v1681_v29, %v1688_v0 }
  0x47   :  { %vm297_vm1 = vc.u32 %v289_v62, %v293_v63  ;;  %v299_v24 = vadd.s32 %v293_v63, %v289_v62  ;;  %v278_v27 = vadd.s32 %v276_v45, %v270_v3  ;;  %vm279_vm2 = vc.u32 %v277_v14, %v273_v9 }
  0x48   :  { %vm189_vm15 = vcmp.lt.s32.totalorder %v188_v37, 0  ;;  %v190_v1 = vsub.s32 0, %v188_v37  ;;  %v298_v31 = vsel %vm297_vm1, 1, %v1528_v4  ;;  %v280_v57 = vsel %vm279_vm2, 1, %v1528_v4 }
  0x49   :  { %v300_v35 = vadd.s32 %v298_v31, %v292_v11  ;;  %vm301_vm3 = vc.u32 %v299_v24, %v295_v53  ;;  %v282_v32 = vadd.s32 %v280_v57, %v278_v27  ;;  %v296_v60 = vshrl.u32 %v291_v50, 16 }
  0x4a   :  { %v191_v54 = vsel %vm189_vm15, %v190_v1, %v188_v37  ;;  %v302_v42 = vsel %vm301_vm3, 1, %v1528_v4  ;;  %v253_v46 = vsel %vm247_vm14, %v250_v59, %v252_v30  ;;  %v1758_v52 = vadd.s32 %v299_v24, %v295_v53 }
  0x4b   :  { %v192_v22 = vclz %v191_v54  ;;  %v304_v15 = vadd.s32 %v302_v42, %v300_v35  ;;  %v283_v51 = vadd.s32 %v282_v32, %v272_v8  ;;  %v401_v0 = vand.u32 2147483647, %v1594_v56 }
  0x4c   :  { %vm412_vm5 = vcmp.gt.s32.totalorder %v411_v44, 0  ;;  %v307_v6 = vmul.u32 %v1730_v36, %v253_v46  ;;  %vm1786_vm7 = vcmp.le.f32.partialorder %v86_v26, 0.7853982  ;;  %vm88_vm8 = vcmp.lt.s32.totalorder %v1572_v20, 0 }
  0x4d   :  { %v1176_v38 = vadd.s32 4294967294, %v192_v22  ;;  %v305_v1 = vadd.s32 %v304_v15, %v294_v28  ;;  %v1760_v29 = vadd.s32 %v283_v51, %v274_v41  ;;  %v413_v49 = vsel %vm412_vm5, %v411_v44, 0 }
  0x4e   :  { %v415_v39 = vand.u32 31, %v413_v49  ;;  %v408_v8 = vand.u32 8388607, %v401_v0  ;;  %v1779_v57 = vshrl.u32 %v413_v49, 5  ;;  %v210_v42 = vsub.s32 4, %v1734_v34 }
  0x4f   :  { %vm1177_vm4 = vcmp.lt.s32.totalorder %v1176_v38, 0  ;;  %v306_v3 = vadd.s32 %v305_v1, %v296_v60  ;;  %vm309_vm6 = vc.u32 %v1760_v29, %v1758_v52  ;;  %vm216_vm11 = vcmp.lt.s32.totalorder %v1577_v25, 0 }
  0x50   :  { %v195_v17 = vsel %vm1177_vm4, 0, %v1176_v38  ;;  %v1766_v9 = vsub.s32 32, %v415_v39  ;;  %v421_v22 = vshll.u32 %v1523_v10, %v415_v39  ;;  %v424_v36 = vshll.u32 %v1524_v12, %v415_v39 }
  0x51   :  { %v196_v33 = vsub.s32 32, %v195_v17  ;;  %v197_v62 = vshll.u32 %v188_v37, %v195_v17  ;;  %v200_v63 = vsub.s32 4294967266, %v195_v17  ;;  %v310_v37 = vadd.s32 1, %v306_v3 }
  0x52   :  { %v427_v45 = vshll.u32 %v1525_v21, %v415_v39  ;;  %v422_v27 = vshrl.u32 %v1524_v12, %v1766_v9  ;;  %v425_v28 = vshrl.u32 %v1525_v21, %v1766_v9  ;;  %v428_v31 = vshrl.u32 %v1526_v23, %v1766_v9 }
  0x53   :  { %v198_v61 = vshrl.u32 %v180_v40, %v196_v33  ;;  %v201_v50 = vadd.s32 127, %v200_v63  ;;  %v311_v54 = vsel %vm309_vm6, %v310_v37, %v306_v3  ;;  %v430_v35 = vshll.u32 %v1526_v23, %v415_v39 }
  0x54   :  { %v312_v14 = vadd.s32 %v311_v54, %v307_v6  ;;  %v431_v40 = vshrl.u32 %v1527_v43, %v1766_v9  ;;  %v409_v15 = vor.u32 8388608, %v408_v8  ;;  %v418_v44 = vshll.u32 %v1522_v2, %v415_v39 }
  0x55   :  { %v199_v59 = vor.u32 %v198_v61, %v197_v62  ;;  %v202_v30 = vshll.u32 %v201_v50, 23  ;;  %v419_v17 = vshrl.u32 %v1523_v10, %v1766_v9  ;;  %v423_v51 = vor.u32 %v422_v27, %v421_v22 }
  0x56   :  { %v313_v38 = vadd.s32 536870912, %v312_v14  ;;  %v426_v33 = vor.u32 %v425_v28, %v424_v36  ;;  %v429_v62 = vor.u32 %v428_v31, %v427_v45  ;;  %v432_v63 = vor.u32 %v431_v40, %v430_v35 }
  0x57   :  { %v203_v11 = vor.u32 4788187, %v202_v30  ;;  %v206_v53 = vcvt.s32.f32 %v199_v59  ;;  %vm433_vm9 = vcmp.lt.s32.totalorder %v1779_v57, 1  ;;  %vm436_vm10 = vcmp.lt.s32.totalorder %v1779_v57, 4 }
  0x58   :  { %v314_v60 = vshrl.u32 %v313_v38, 30  ;;  %v211_v61 = vsel %vm88_vm8, %v210_v42, %v1734_v34  ;;  %v1803_v50 = vunpack.i.h.bf16 %v1563_v16  ;;  %v420_v6 = vor.u32 %v419_v17, %v418_v44 }
  0x59   :  { %v204_v24 = vand.u32 2147483647, %v203_v11  ;;  %vm435_vm12 = vcmp.lt.s32.totalorder %v1779_v57, 3  ;;  %vm434_vm13 = vcmp.lt.s32.totalorder %v1779_v57, 2  ;;  %v442_v16 = vsel %vm436_vm10, %v429_v62, 920167782 }
  0x5a   :  { %v315_v26 = vshll.u32 %v314_v60, 30  ;;  %v445_v34 = vsel %vm433_vm9, %v423_v51, %v426_v33  ;;  %v446_v30 = vsel %vm436_vm10, %v432_v63, 1326507024  ;;  %v1823_v37 = vshll.u32 %v409_v15, 8 }
  0x5b   :  { %v207_v32 = vmul.f32 %v206_v53, %v204_v24  ;;  %v447_v54 = vsel %vm435_vm12, %v429_v62, %v446_v30  ;;  %v532_v8 = vand.u32 2139095040, %v1803_v50  ;;  %v441_v22 = vsel %vm433_vm9, %v420_v6, %v423_v51 }
  0x5c   :  { %v316_v49 = vsub.s32 %v312_v14, %v315_v26  ;;  %v443_v36 = vsel %vm435_vm12, %v426_v33, %v442_v16  ;;  %v448_v45 = vsel %vm434_vm13, %v445_v34, %v447_v54  ;;  %v338_v27 = vsub.s32 4, %v314_v60 }
  0x5d   :  { %v208_v46 = vxor.u32 2147483648, %v207_v32  ;;  %v213_v38 = vsel %vm1786_vm7, 0, %v211_v61  ;;  %vm1840_vm15 = vcmp.le.f32.partialorder %v214_v48, 0.7853982  ;;  %v450_v40 = vand.u32 65535, %v1823_v37 }
  0x5e   :  { %vm317_vm14 = vcmp.lt.s32.totalorder %v316_v49, 0  ;;  %v318_v59 = vsub.s32 0, %v316_v49  ;;  %v444_v44 = vsel %vm434_vm13, %v441_v22, %v443_v36  ;;  %v453_v17 = vshrl.u32 %v448_v45, 16 }
  0x5f   :  { %v209_v1 = vsel %vm88_vm8, %v208_v46, %v207_v32  ;;  %v451_v32 = vshrl.u32 %v1823_v37, 16  ;;  %v308_v41 = vadd.s32 %v1758_v52, %v1760_v29  ;;  %v417_v48 = vshrl.u32 %v1522_v2, %v1766_v9 }
  0x60   :  { %v1808_v3 = vsel %vm1786_vm7, %v1572_v20, %v209_v1  ;;  %v319_v14 = vsel %vm317_vm14, %v318_v59, %v316_v49  ;;  %v452_v46 = vand.u32 65535, %v448_v45  ;;  %v533_v62 = vshrl.u32 %v532_v8, 23 }
  0x61   :  { %v1814_v39 = vmul.f32 %v1808_v3, %v1808_v3  ;;  %v320_v24 = vclz %v319_v14  ;;  %v339_v26 = vsel %vm216_vm11, %v338_v27, %v314_v60  ;;  %v438_v1 = vsel %vm436_vm10, %v426_v33, 2102212464 }
  0x62   :  { %v374_v34 = vadd.s32 3, %v213_v38  ;;  %v475_v59 = vshrl.u32 %v444_v44, 16  ;;  %v437_v9 = vsel %vm433_vm9, %v417_v48, %v420_v6  ;;  %v456_v60 = vmul.u32 %v452_v46, %v451_v32 }
  0x63   :  { %v343_v11 = vmul.f32 -0.001358992, %v1814_v39  ;;  %v357_v53 = vmul.f32 -0.00019511016, %v1814_v39  ;;  %v1179_v42 = vadd.s32 4294967294, %v320_v24  ;;  %v474_v54 = vand.u32 65535, %v444_v44 }
  0x64   :  { %v454_v33 = vmul.u32 %v452_v46, %v450_v40  ;;  %v341_v36 = vsel %vm1840_vm15, 0, %v339_v26  ;;  %v477_v24 = vmul.u32 %v475_v59, %v450_v40  ;;  %v457_v6 = vmul.u32 %v453_v17, %v451_v32 }
  0x65   :  { %v344_v28 = vadd.f32 0.041655596, %v343_v11  ;;  %v358_v31 = vadd.f32 0.008332121, %v357_v53  ;;  %vm1180_vm0 = vcmp.lt.s32.totalorder %v1179_v42, 0  ;;  %v455_v11 = vmul.u32 %v453_v17, %v450_v40 }
  0x66   :  { %v323_v61 = vsel %vm1180_vm0, 0, %v1179_v42  ;;  %v439_v53 = vsel %vm435_vm12, %v423_v51, %v438_v1  ;;  %v460_v38 = vshll.u32 %v456_v60, 16  ;;  %v476_v42 = vmul.u32 %v474_v54, %v450_v40 }
  0x67   :  { %v359_v15 = vmul.f32 %v358_v31, %v1814_v39  ;;  %v345_v63 = vmul.f32 %v344_v28, %v1814_v39  ;;  %v324_v30 = vsub.s32 32, %v323_v61  ;;  %v325_v52 = vshll.u32 %v316_v49, %v323_v61 }
  0x68   :  { %v328_v29 = vsub.s32 4294967266, %v323_v61  ;;  %v1865_v49 = vand.u32 3, %v374_v34  ;;  %v458_v31 = vshll.u32 %v455_v11, 16  ;;  %v1869_v51 = vsel %vm434_vm13, %v437_v9, %v439_v53 }
  0x69   :  { %v360_v16 = vadd.f32 -0.16666654, %v359_v15  ;;  %v326_v8 = vshrl.u32 %v308_v41, %v324_v30  ;;  %v346_v22 = vadd.f32 -0.4999988, %v345_v63  ;;  %v478_v15 = vmul.u32 %v474_v54, %v451_v32 }
  0x6a   :  { %v329_v14 = vadd.s32 127, %v328_v29  ;;  %vm462_vm1 = vc.u32 %v454_v33, %v458_v31  ;;  %v385_v26 = vadd.s32 3, %v341_v36  ;;  %v464_v1 = vadd.s32 %v458_v31, %v454_v33 }
  0x6b   :  { %v361_v45 = vmul.f32 %v360_v16, %v1814_v39  ;;  %v327_v27 = vor.u32 %v326_v8, %v325_v52  ;;  %v347_v48 = vmul.f32 %v346_v22, %v1814_v39  ;;  %v463_v63 = vsel %vm462_vm1, 1, %v1528_v4 }
  0x6c   :  { %v330_v28 = vshll.u32 %v329_v14, 23  ;;  %vm377_vm2 = vcmp.eq.s32.totalorder %v1865_v49, 0  ;;  %v465_v17 = vadd.s32 %v463_v63, %v457_v6  ;;  %v480_v57 = vshll.u32 %v477_v24, 16 }
  0x6d   :  { %v334_v41 = vcvt.s32.f32 %v327_v27  ;;  %v362_v46 = vadd.f32 1.0, %v361_v45  ;;  %v459_v16 = vshrl.u32 %v455_v11, 16  ;;  %vm466_vm3 = vc.u32 %v464_v1, %v460_v38 }
  0x6e   :  { %v331_v44 = vor.u32 4788187, %v330_v28  ;;  %v479_v34 = vmul.u32 %v475_v59, %v451_v32  ;;  %v482_v40 = vshll.u32 %v478_v15, 16  ;;  %v348_v52 = vadd.f32 1.0, %v347_v48 }
  0x6f   :  { %vm380_vm4 = vcmp.eq.s32.totalorder %v1865_v49, 2  ;;  %v467_v39 = vsel %vm466_vm3, 1, %v1528_v4  ;;  %v363_v29 = vmul.f32 %v362_v46, %v1808_v3  ;;  %vm484_vm5 = vc.u32 %v476_v42, %v480_v57 }
  0x70   :  { %v332_v61 = vand.u32 2147483647, %v331_v44  ;;  %v469_v9 = vadd.s32 %v467_v39, %v465_v17  ;;  %v486_v53 = vadd.s32 %v480_v57, %v476_v42  ;;  %v461_v8 = vshrl.u32 %v456_v60, 16 }
  0x71   :  { %v485_v14 = vsel %vm484_vm5, 1, %v1528_v4  ;;  %v1184_v22 = vadd.s32 4294967169, %v533_v62  ;;  %v481_v33 = vshrl.u32 %v477_v24, 16  ;;  %v381_v36 = vxor.u32 2147483648, %v348_v52 }
  0x72   :  { %v335_v30 = vmul.f32 %v334_v41, %v332_v61  ;;  %v470_v11 = vadd.s32 %v469_v9, %v459_v16  ;;  %v487_v32 = vadd.s32 %v485_v14, %v479_v34  ;;  %vm488_vm6 = vc.u32 %v486_v53, %v482_v40 }
  0x73   :  { %v489_v45 = vsel %vm488_vm6, 1, %v1528_v4  ;;  %v539_v27 = vadd.s32 1, %v1184_v22  ;;  %v378_v60 = vxor.u32 2147483648, %v363_v29  ;;  %v483_v28 = vshrl.u32 %v478_v15, 16 }
  0x74   :  { %v336_v54 = vxor.u32 2147483648, %v335_v30  ;;  %v491_v6 = vadd.s32 %v489_v45, %v487_v32  ;;  %v1888_v24 = vadd.s32 %v470_v11, %v461_v8  ;;  %v1890_v31 = vadd.s32 %v486_v53, %v482_v40 }
  0x75   :  { %vm540_vm7 = vcmp.gt.s32.totalorder %v539_v27, 0  ;;  %v1892_v38 = vand.u32 3, %v385_v26  ;;  %v529_v44 = vand.u32 2147483647, %v1803_v50  ;;  %vm376_vm8 = vcmp.lt.s32.totalorder %v1865_v49, 2 }
  0x76   :  { %v337_v59 = vsel %vm216_vm11, %v336_v54, %v335_v30  ;;  %v492_v42 = vadd.s32 %v491_v6, %v481_v33  ;;  %v541_v41 = vsel %vm540_vm7, %v539_v27, 0  ;;  %v494_v15 = vmul.u32 %v1823_v37, %v1869_v51 }
  0x77   :  { %v1884_v3 = vsel %vm1840_vm15, %v1577_v25, %v337_v59  ;;  %v379_v46 = vsel %vm377_vm2, %v348_v52, %v378_v60  ;;  %v382_v63 = vsel %vm380_vm4, %v381_v36, %v363_v29  ;;  %v543_v26 = vand.u32 31, %v541_v41 }
  0x78   :  { %v349_v62 = vmul.f32 %v1884_v3, %v1884_v3  ;;  %v493_v1 = vadd.s32 %v492_v42, %v483_v28  ;;  %vm372_vm9 = vweird.f32 %v1572_v20  ;;  %vm496_vm10 = vc.u32 %v1888_v24, %v1890_v31 }
  0x79   :  { %vm391_vm11 = vcmp.eq.s32.totalorder %v1892_v38, 2  ;;  %v536_v37 = vand.u32 8388607, %v529_v44  ;;  %v544_v51 = vsub.s32 32, %v543_v26  ;;  %v383_v40 = vsel %vm376_vm8, %v379_v46, %v382_v63 }
  0x7a   :  { %v350_v35 = vmul.f32 -0.001358992, %v349_v62  ;;  %v365_v48 = vmul.f32 -0.00019511016, %v349_v62  ;;  %v497_v57 = vadd.s32 1, %v493_v1  ;;  %v546_v30 = vshll.u32 %v1522_v2, %v543_v26 }
  0x7b   :  { %vm388_vm12 = vcmp.eq.s32.totalorder %v1892_v38, 0  ;;  %v547_v39 = vshrl.u32 %v1523_v10, %v544_v51  ;;  %v549_v29 = vshll.u32 %v1523_v10, %v543_v26  ;;  %v550_v9 = vshrl.u32 %v1524_v12, %v544_v51 }
  0x7c   :  { %v351_v61 = vadd.f32 0.041655596, %v350_v35  ;;  %v366_v17 = vadd.f32 0.008332121, %v365_v48  ;;  %v498_v52 = vsel %vm496_vm10, %v497_v57, %v493_v1  ;;  %vm387_vm13 = vcmp.lt.s32.totalorder %v1892_v38, 2 }
  0x7d   :  { %v499_v8 = vadd.s32 %v498_v52, %v494_v15  ;;  %v555_v14 = vshll.u32 %v1525_v21, %v543_v26  ;;  %vm373_vm14 = vweird.f32 %v1577_v25  ;;  %v537_v49 = vor.u32 8388608, %v536_v37 }
  0x7e   :  { %v352_v16 = vmul.f32 %v351_v61, %v349_v62  ;;  %v367_v34 = vmul.f32 %v366_v17, %v349_v62  ;;  %v1918_v22 = vshrl.u32 %v541_v41, 5  ;;  %v552_v11 = vshll.u32 %v1524_v12, %v543_v26 }
  0x7f   :  { %v553_v33 = vshrl.u32 %v1525_v21, %v544_v51  ;;  %v500_v59 = vadd.s32 536870912, %v499_v8  ;;  %v556_v36 = vshrl.u32 %v1526_v23, %v544_v51  ;;  %v548_v45 = vor.u32 %v547_v39, %v546_v30 }
  0x80   :  { %v353_v53 = vadd.f32 -0.4999988, %v352_v16  ;;  %v368_v54 = vadd.f32 -0.16666654, %v367_v34  ;;  %v551_v27 = vor.u32 %v550_v9, %v549_v29  ;;  %v558_v60 = vshll.u32 %v1526_v23, %v543_v26 }
  0x81   :  { %v559_v28 = vshrl.u32 %v1527_v43, %v544_v51  ;;  %v1925_v35 = vshrl.u32 %v500_v59, 30  ;;  %v557_v41 = vor.u32 %v556_v36, %v555_v14  ;;  %v554_v48 = vor.u32 %v553_v33, %v552_v11 }
  0x82   :  { %v354_v32 = vmul.f32 %v353_v53, %v349_v62  ;;  %v369_v10 = vmul.f32 %v368_v54, %v349_v62  ;;  %vm561_vm15 = vcmp.lt.s32.totalorder %v1918_v22, 1  ;;  %vm564_vm0 = vcmp.lt.s32.totalorder %v1918_v22, 4 }
  0x83   :  { %v1929_v12 = vshll.u32 %v537_v49, 8  ;;  %v502_v15 = vshll.u32 %v1925_v35, 30  ;;  %vm563_vm1 = vcmp.lt.s32.totalorder %v1918_v22, 3  ;;  %v384_v23 = vsel %vm372_vm9, nan, %v383_v40 }
  0x84   :  { %v355_v6 = vadd.f32 1.0, %v354_v32  ;;  %v370_v42 = vadd.f32 1.0, %v369_v10  ;;  %v560_v43 = vor.u32 %v559_v28, %v558_v60  ;;  %vm562_vm2 = vcmp.lt.s32.totalorder %v1918_v22, 2 }
  0x85   :  { %v570_v46 = vsel %vm564_vm0, %v557_v41, 920167782  ;;  %v1941_v26 = vsub.s32 %v499_v8, %v502_v15  ;;  %v545_v61 = vshrl.u32 %v1522_v2, %v544_v51  ;;  %v578_v17 = vand.u32 65535, %v1929_v12 }
  0x86   :  { %v371_v21 = vmul.f32 %v370_v42, %v1884_v3  ;;  %v392_v62 = vxor.u32 2147483648, %v355_v6  ;;  %v569_v3 = vsel %vm561_vm15, %v548_v45, %v551_v27  ;;  %v571_v20 = vsel %vm563_vm1, %v554_v48, %v570_v46 }
  0x87   :  { %v579_v57 = vshrl.u32 %v1929_v12, 16  ;;  %vm504_vm3 = vcmp.lt.s32.totalorder %v1941_v26, 0  ;;  %v505_v16 = vsub.s32 0, %v1941_v26  ;;  %v573_v34 = vsel %vm561_vm15, %v551_v27, %v554_v48 }
  0x88   :  { %v389_v63 = vxor.u32 2147483648, %v371_v21  ;;  %v393_v1 = vsel %vm391_vm11, %v392_v62, %v371_v21  ;;  %v566_v51 = vsel %vm564_vm0, %v554_v48, 2102212464  ;;  %v572_v40 = vsel %vm562_vm2, %v569_v3, %v571_v20 }
  0x89   :  { %v574_v30 = vsel %vm564_vm0, %v560_v43, 1326507024  ;;  %v506_v39 = vsel %vm504_vm3, %v505_v16, %v1941_v26  ;;  %v602_v9 = vand.u32 65535, %v572_v40  ;;  %v603_v8 = vshrl.u32 %v572_v40, 16 }
  0x8a   :  { %v390_v37 = vsel %vm388_vm12, %v355_v6, %v389_v63  ;;  %v575_v29 = vsel %vm563_vm1, %v557_v41, %v574_v30  ;;  %v507_v53 = vclz %v506_v39  ;;  %v495_v14 = vadd.s32 %v1890_v31, %v1888_v24 }
  0x8b   :  { %v394_v2 = vsel %vm387_vm13, %v390_v37, %v393_v1  ;;  %v576_v54 = vsel %vm562_vm2, %v573_v34, %v575_v29  ;;  %v565_v49 = vsel %vm561_vm15, %v545_v61, %v548_v45  ;;  %v567_v10 = vsel %vm563_vm1, %v551_v27, %v566_v51  ;;  %v1370_v51 = vld [vmem:[#allocation2 + $0x18] sm:$0xf0] }
  0x8c   :  { %v395_v52 = vsel %vm373_vm14, nan, %v394_v2  ;;  %v580_v25 = vand.u32 65535, %v576_v54  ;;  %v581_v11 = vshrl.u32 %v576_v54, 16  ;;  %v1182_v32 = vadd.s32 4294967294, %v507_v53 }
  0x8d   :  { %v396_v38 = vpack.i.bf16 %v395_v52, %v384_v23  ;;  %v605_v59 = vmul.u32 %v603_v8, %v578_v17  ;;  %v606_v6 = vmul.u32 %v602_v9, %v579_v57  ;;  %v604_v41 = vmul.u32 %v602_v9, %v578_v17 }
  0x8e   :  { %v582_v36 = vmul.u32 %v580_v25, %v578_v17  ;;  %v583_v60 = vmul.u32 %v581_v11, %v578_v17  ;;  %v584_v28 = vmul.u32 %v580_v25, %v579_v57  ;;  %vm1183_vm4 = vcmp.lt.s32.totalorder %v1182_v32, 0 }
  0x8f   :  { %v1424_v33 = vunpack.c.l.bf16 %v396_v38  ;;  %v608_v24 = vshll.u32 %v605_v59, 16  ;;  %v510_v31 = vsel %vm1183_vm4, 0, %v1182_v32  ;;  %v585_v48 = vmul.u32 %v581_v11, %v579_v57 }
  0x90   :  { %v586_v45 = vshll.u32 %v583_v60, 16  ;;  %v588_v21 = vshll.u32 %v584_v28, 16  ;;  %v511_v62 = vsub.s32 32, %v510_v31  ;;  %v515_v15 = vsub.s32 4294967266, %v510_v31 }
  0x91   :  { %v1425_v42 = vpack.c.bf16 %v1424_v33, %v1707_v47  ;;  %v587_v23 = vshrl.u32 %v583_v60, 16  ;;  %v607_v43 = vmul.u32 %v603_v8, %v579_v57  ;;  %v512_v27 = vshll.u32 %v1941_v26, %v510_v31 }
  0x92   :  { %vm590_vm5 = vc.u32 %v582_v36, %v586_v45  ;;  %v592_v46 = vadd.s32 %v586_v45, %v582_v36  ;;  %v610_v63 = vshll.u32 %v606_v6, 16  ;;  %v513_v1 = vshrl.u32 %v495_v14, %v511_v62 }
  0x93   :  { %1433 = vst [vmem:[#allocation2 + $0x8] sm:$0xff] %v1425_v42   ;;  %v516_v3 = vadd.s32 127, %v515_v15  ;;  %v591_v61 = vsel %vm590_vm5, 1, %v1528_v4  ;;  %vm612_vm6 = vc.u32 %v604_v41, %v608_v24  ;;  %v614_v37 = vadd.s32 %v608_v24, %v604_v41 }
  0x94   :  { %v593_v20 = vadd.s32 %v591_v61, %v585_v48  ;;  %vm594_vm7 = vc.u32 %v592_v46, %v588_v21  ;;  %v613_v17 = vsel %vm612_vm6, 1, %v1528_v4  ;;  %v609_v2 = vshrl.u32 %v605_v59, 16 }
  0x95   :  { %v517_v16 = vshll.u32 %v516_v3, 23  ;;  %v595_v34 = vsel %vm594_vm7, 1, %v1528_v4  ;;  %v615_v57 = vadd.s32 %v613_v17, %v607_v43  ;;  %v514_v26 = vor.u32 %v513_v1, %v512_v27 }
  0x96   :  { %v589_v40 = vshrl.u32 %v584_v28, 16  ;;  %v597_v30 = vadd.s32 %v595_v34, %v593_v20  ;;  %vm616_vm8 = vc.u32 %v614_v37, %v610_v63  ;;  %v611_v38 = vshrl.u32 %v606_v6, 16 }
  0x97   :  { %v518_v52 = vor.u32 4788187, %v517_v16  ;;  %v617_v39 = vsel %vm616_vm8, 1, %v1528_v4  ;;  %v568_v8 = vsel %vm562_vm2, %v565_v49, %v567_v10  ;;  %v618_v14 = vadd.s32 %v614_v37, %v610_v63 }
  0x98   :  { %v598_v9 = vadd.s32 %v597_v30, %v587_v23  ;;  %v619_v53 = vadd.s32 %v617_v39, %v615_v57  ;;  %v521_v11 = vcvt.s32.f32 %v514_v26  ;;  %v622_v36 = vmul.u32 %v1929_v12, %v568_v8 }
  0x99   :  { %v519_v25 = vand.u32 2147483647, %v518_v52  ;;  %vm403_vm10 = vcmp.lt.s32.totalorder %v1594_v56, 0  ;;  %vm1989_vm11 = vcmp.le.f32.partialorder %v401_v0, 0.7853982  ;;  %v525_v26 = vsub.s32 4, %v1925_v35 }
  0x9a   :  { %v1197_v29 = vld [vmem:[#allocation2 + $0x8] sm:$0xf]  ;;  %v599_v33 = vadd.s32 %v598_v9, %v589_v40  ;;  %v620_v32 = vadd.s32 %v619_v53, %v609_v2  ;;  %v712_v2 = vunpack.c.l.bf16 %v64_v13  ;;  %vm531_vm14 = vcmp.lt.s32.totalorder %v1803_v50, 0 }
  0x9b   :  { %v1198_v54 = vor.u32 %v1370_v51, %v1197_v29  ;;  %v522_v60 = vmul.f32 %v521_v11, %v519_v25  ;;  %v526_v9 = vsel %vm403_vm10, %v525_v26, %v1925_v35  ;;  %vm2009_vm15 = vcmp.le.f32.partialorder %v529_v44, 0.7853982 }
  0x9c   :  { %v621_v59 = vadd.s32 %v620_v32, %v611_v38  ;;  %vm624_vm9 = vc.u32 %v599_v33, %v618_v14  ;;  %v623_v0 = vadd.s32 %v618_v14, %v599_v33  ;;  %v714_v39 = vmul.f32 %v712_v2, %v1566_v18 }
  0x9d   :  { %1120 = vmatmul.bf16.vlgmr.msra.gmra.mxu2 %v1198_v54  ;;  %v523_v6 = vxor.u32 2147483648, %v522_v60  ;;  %v528_v18 = vsel %vm1989_vm11, 0, %v526_v9  ;;  %vm687_vm4 = vweird.f32 %v1594_v56  ;;  %vm688_vm7 = vweird.f32 %v1803_v50 }
  0x9e   :  { %v625_v4 = vadd.s32 1, %v621_v59  ;;  %v716_v53 = vpack.c.bf16 %v714_v39, %v714_v39  ;;  %v689_v44 = vadd.s32 3, %v528_v18 }
  0x9f   :  { %v524_v10 = vsel %vm403_vm10, %v523_v6, %v522_v60 }
  0xa0   :  { %v626_v28 = vsel %vm624_vm9, %v625_v4, %v621_v59  ;;  %v527_v24 = vsel %vm1989_vm11, %v1594_v56, %v524_v10  ;;  %726 = vst [vmem:[#allocation2 + $0x10] sm:$0xf] %v716_v53  ;;  %v690_v6 = vand.u32 3, %v689_v44 }
  0xa1   :  { %v627_v42 = vadd.s32 %v626_v28, %v622_v36  ;;  %v657_v45 = vmul.f32 %v527_v24, %v527_v24 }
  0xa2   :  { %vm692_vm0 = vcmp.eq.s32.totalorder %v690_v6, 0  ;;  %vm695_vm1 = vcmp.eq.s32.totalorder %v690_v6, 2  ;;  %vm691_vm2 = vcmp.lt.s32.totalorder %v690_v6, 2 }
  0xa3   :  { %v628_v41 = vadd.s32 536870912, %v627_v42  ;;  %v672_v23 = vmul.f32 -0.00019511016, %v657_v45  ;;  %v658_v27 = vmul.f32 -0.001358992, %v657_v45  ;;  %v1093_v58 = vpop.f32.mrf.mxu0 }
  0xa4   :  { %v1094_v39 = vadd.f32 %v1449_v55, %v1093_v58 }
  0xa5   :  { %v629_v22 = vshrl.u32 %v628_v41, 30  ;;  %v673_v3 = vadd.f32 0.008332121, %v672_v23  ;;  %v659_v16 = vadd.f32 0.041655596, %v658_v27 }
  0xa7   :  { %v630_v12 = vshll.u32 %v629_v22, 30  ;;  %v674_v34 = vmul.f32 %v673_v3, %v657_v45  ;;  %v660_v30 = vmul.f32 %v659_v16, %v657_v45  ;;  %v653_v38 = vsub.s32 4, %v629_v22 }
  0xa8   :  { %v713_v3 = vunpack.c.l.bf16 %v71_v5 }
  0xa9   :  { %v631_v31 = vsub.s32 %v627_v42, %v630_v12  ;;  %v675_v52 = vadd.f32 -0.16666654, %v674_v34  ;;  %v661_v13 = vadd.f32 -0.4999988, %v660_v30  ;;  %v654_v14 = vsel %vm531_vm14, %v653_v38, %v629_v22 }
  0xaa   :  { %v656_v32 = vsel %vm2009_vm15, 0, %v654_v14  ;;  %v715_v34 = vmul.f32 %v713_v3, %v1569_v19 }
  0xab   :  { %vm632_vm12 = vcmp.lt.s32.totalorder %v631_v31, 0  ;;  %v633_v48 = vsub.s32 0, %v631_v31  ;;  %v676_v54 = vmul.f32 %v675_v52, %v657_v45  ;;  %v662_v25 = vmul.f32 %v661_v13, %v657_v45  ;;  %v1095_v52 = vpop.f32.mrf.mxu0 }
  0xac   :  { %v700_v41 = vadd.s32 3, %v656_v32  ;;  %v1096_v38 = vadd.f32 %v1449_v55, %v1095_v52 }
  0xad   :  { %v634_v21 = vsel %vm632_vm12, %v633_v48, %v631_v31  ;;  %v677_v33 = vadd.f32 1.0, %v676_v54  ;;  %v663_v60 = vadd.f32 1.0, %v662_v25 }
  0xae   :  { %v635_v62 = vclz %v634_v21  ;;  %v701_v45 = vand.u32 3, %v700_v41 }
  0xaf   :  { %v678_v28 = vmul.f32 %v677_v33, %v527_v24  ;;  %v696_v48 = vxor.u32 2147483648, %v663_v60 }
  0xb0   :  { %v1185_v15 = vadd.s32 4294967294, %v635_v62  ;;  %vm706_vm3 = vcmp.eq.s32.totalorder %v701_v45, 2  ;;  %vm703_vm5 = vcmp.eq.s32.totalorder %v701_v45, 0  ;;  %vm702_vm6 = vcmp.lt.s32.totalorder %v701_v45, 2 }
  0xb2   :  { %vm1186_vm13 = vcmp.lt.s32.totalorder %v1185_v15, 0 }
  0xb3   :  { %v638_v43 = vsel %vm1186_vm13, 0, %v1185_v15 }
  0xb4   :  { %v639_v46 = vsub.s32 32, %v638_v43  ;;  %v640_v63 = vshll.u32 %v631_v31, %v638_v43  ;;  %v643_v1 = vsub.s32 4294967266, %v638_v43  ;;  %v693_v31 = vxor.u32 2147483648, %v678_v28 }
  0xb5   :  { %v697_v43 = vsel %vm695_vm1, %v696_v48, %v678_v28 }
  0xb6   :  { %v641_v61 = vshrl.u32 %v623_v0, %v639_v46  ;;  %v644_v20 = vadd.s32 127, %v643_v1  ;;  %v694_v0 = vsel %vm692_vm0, %v663_v60, %v693_v31 }
  0xb7   :  { %v698_v46 = vsel %vm691_vm2, %v694_v0, %v697_v43 }
  0xb8   :  { %v642_v17 = vor.u32 %v641_v61, %v640_v63  ;;  %v645_v37 = vshll.u32 %v644_v20, 23  ;;  %v699_v61 = vsel %vm687_vm4, nan, %v698_v46 }
  0xba   :  { %v646_v57 = vor.u32 4788187, %v645_v37  ;;  %v649_v51 = vcvt.s32.f32 %v642_v17 }
  0xbb   :  { %v1107_v5 = vpop.f32.mrf.mxu1 }
  0xbc   :  { %v647_v40 = vand.u32 2147483647, %v646_v57  ;;  %v1368_v57 = vld [vmem:[#allocation2 + $0xc] sm:$0xf] }
  0xbe   :  { %v650_v29 = vmul.f32 %v649_v51, %v647_v40  ;;  %v1205_v51 = vld [vmem:[#allocation2 + $0x10] sm:$0xf] }
  0xc0   :  { %v651_v47 = vxor.u32 2147483648, %v650_v29 }
  0xc2   :  { %v652_v8 = vsel %vm531_vm14, %v651_v47, %v650_v29  ;;  %v1108_v29 = vadd.f32 %v1107_v5, %v1094_v39 }
  0xc3   :  { %v655_v35 = vsel %vm2009_vm15, %v1803_v50, %v652_v8  ;;  %v1109_v53 = vpop.f32.mrf.mxu1 }
  0xc4   :  { %v664_v11 = vmul.f32 %v655_v35, %v655_v35  ;;  %v1110_v18 = vadd.f32 %v1109_v53, %v1096_v38 }
  0xc6   :  { %v665_v59 = vmul.f32 -0.001358992, %v664_v11  ;;  %v680_v36 = vmul.f32 -0.00019511016, %v664_v11 }
  0xc8   :  { %v666_v4 = vadd.f32 0.041655596, %v665_v59  ;;  %v681_v42 = vadd.f32 0.008332121, %v680_v36 }
  0xca   :  { %v667_v22 = vmul.f32 %v666_v4, %v664_v11  ;;  %v682_v49 = vmul.f32 %v681_v42, %v664_v11 }
  0xcc   :  { %v668_v10 = vadd.f32 -0.4999988, %v667_v22  ;;  %v683_v12 = vadd.f32 -0.16666654, %v682_v49 }
  0xce   :  { %v669_v21 = vmul.f32 %v668_v10, %v664_v11  ;;  %v684_v62 = vmul.f32 %v683_v12, %v664_v11 }
  0xd0   :  { %v670_v15 = vadd.f32 1.0, %v669_v21  ;;  %v685_v23 = vadd.f32 1.0, %v684_v62 }
  0xd2   :  { %v686_v24 = vmul.f32 %v685_v23, %v655_v35  ;;  %v707_v27 = vxor.u32 2147483648, %v670_v15 }
  0xd4   :  { %v704_v63 = vxor.u32 2147483648, %v686_v24  ;;  %v708_v1 = vsel %vm706_vm3, %v707_v27, %v686_v24 }
  0xd6   :  { %v705_v20 = vsel %vm703_vm5, %v670_v15, %v704_v63 }
  0xd7   :  { %v709_v17 = vsel %vm702_vm6, %v705_v20, %v708_v1 }
  0xd8   :  { %v710_v37 = vsel %vm688_vm7, nan, %v709_v17 }
  0xd9   :  { %v711_v16 = vpack.i.bf16 %v710_v37, %v699_v61 }
  0xdb   :  { %v1428_v2 = vunpack.c.l.bf16 %v711_v16 }
  0xdd   :  { %v1430_v56 = vpack.c.bf16 %v715_v34, %v1428_v2 }
  0xdf   :  { %1434 = vst [vmem:[#allocation2 + $0x20] sm:$0xff] %v1430_v56  }
  0xe6   :  { %v1199_v26 = vld [vmem:[#allocation2 + $0x1c] sm:$0xf0]  ;;  %v1371_v40 = vld [vmem:[#allocation2 + $0x20] sm:$0xf0] }
  0xe7   :  { %v1202_v30 = vor.u32 %v1368_v57, %v1199_v26  ;;  %v1206_v50 = vor.u32 %v1371_v40, %v1205_v51 }
  0xe9   :  { %1134 = vmatmul.bf16.vlgmr.msra.gmra.mxu3 %v1202_v30  ;;  %1148 = vmatmul.bf16.vlgmr.msrb.gmra.mxu0 %v1206_v50 }
 0x120   :  { %v1121_v19 = vpop.f32.mrf.mxu2 }
 0x121   :  { %v1122_v9 = vadd.f32 %v1121_v19, %v1108_v29 }
 0x128   :  { %v1123_v54 = vpop.f32.mrf.mxu2 }
 0x129   :  { %v1124_v14 = vadd.f32 %v1123_v54, %v1110_v18 }
 0x166   :  { %v1149_v7 = vpop.f32.mrf.mxu0 }
 0x16c   :  { %v1135_v47 = vpop.f32.mrf.mxu3 }
 0x16d   :  { %v1136_v13 = vadd.f32 %v1135_v47, %v1122_v9 }
 0x16e   :  { %v1151_v11 = vpop.f32.mrf.mxu0 }
 0x16f   :  { %v1150_v8 = vadd.f32 %v1149_v7, %v1136_v13 }
 0x171   :  { %1154 = vst [vmem:[#allocation6] sm:$0xff] %v1150_v8 }
 0x174   :  { %v1137_v35 = vpop.f32.mrf.mxu3 }
 0x175   :  { %v1138_v25 = vadd.f32 %v1137_v35, %v1124_v14 }
 0x177   :  { %v1152_v33 = vadd.f32 %v1151_v11, %v1138_v25 }
 0x179   :  { %1155 = vst [vmem:[#allocation6 + $0x8] sm:$0xff] %v1152_v33 }
 0x17a   :  { %1168 = dma.vmem_to_hbm [thread:$0]  %s1161_s24, 256, %s1163_s26, [#allocation5], %s1530_s27, %s1530_s27, %s1531_s28  }
 0x17b   :  { %1516 = dma.done.wait [#allocation5], 256  }
 0x17c   :  { %1517 = vsyncadd [#allocation5], 4294967040 }
 0x17d   :  { %1173 = vsyncpa [#allocation4], 1 }
 0x17e   :  { %1174 = vsyncpa [#allocation5], 1 }

</bundles_post_ra>
